<compile_context>
chip_gen: v5e
topology: v5e:2x2
jax: 0.10.0
libtpu: 0.0.40
codegen_flags: <defaults>
</compile_context>

<pallas_src>
import functools

import jax
import jax.numpy as jnp
import numpy as np
from jax.experimental import pallas as pl
from jax.experimental.pallas import tpu as pltpu


def _round_up(x, m):
    return (x + m - 1) // m * m


def _contrastive_tile_kernel(zi_ref, zj_ref, loss_ref, acc_ref, *,
                             n, tile_m, tiles_per_core):
    c = pl.program_id(0)   # TensorCore split ("parallel")
    i = pl.program_id(1)   # row-tile loop ("arbitrary", carried accumulation)

    @pl.when(i == 0)
    def _():
        acc_ref[...] = jnp.zeros_like(acc_ref)

    zi = zi_ref[...].astype(jnp.float32)
    zj = zj_ref[...].astype(jnp.float32)

    # Raw lane reductions only -- no full-tile normalization divides.
    si = jnp.sum(zi * zi, axis=1, keepdims=True)   # (tile_m, 1)  ||emb_i[k]||^2
    sj = jnp.sum(zj * zj, axis=1, keepdims=True)   # (tile_m, 1)  ||emb_j[k]||^2
    p = jnp.sum(zi * zj, axis=1, keepdims=True)    # (tile_m, 1)  <emb_i[k], emb_j[k]>

    # F.normalize clamp (1 / max(||x||, 1e-12)) on per-row scalars only.
    inv_ni = 1.0 / jnp.maximum(jnp.sqrt(si), 1e-12)
    inv_nj = 1.0 / jnp.maximum(jnp.sqrt(sj), 1e-12)

    # Row k contributes (sim[k,k] - pos[k]) + (sim[k+N,k+N] - pos[k]) to the unscaled sum.
    partial = (si * (inv_ni * inv_ni)
               + sj * (inv_nj * inv_nj)
               - 2.0 * p * (inv_ni * inv_nj))

    # Mask tail rows / fully-out-of-range logical tiles (DMA start was clamped in-bounds,
    # so any row whose logical index >= n must contribute exactly 0).
    t = c * tiles_per_core + i
    row = jax.lax.broadcasted_iota(jnp.int32, (tile_m, 1), 0)
    valid = (t * tile_m + row) < n
    acc_ref[...] += jnp.sum(jnp.where(valid, partial, 0.0), axis=0, keepdims=True)

    # Epilogue: lane-dense write of this core's partial sum, once.
    @pl.when(i == pl.num_programs(1) - 1)
    def _():
        loss_ref[...] = jnp.broadcast_to(acc_ref[...], loss_ref.shape)


def _choose_tile_m(n, d, itemsize, block_rows=None):
    row_bytes = max(1, d * itemsize)
    target_rows = max(8, (4 << 20) // row_bytes)        # >= ~4 MiB per input per grid step
    vmem_rows = max(8, (16 << 20) // (4 * row_bytes))   # 2 inputs x 2 pipeline buffers <= ~16 MiB
    tile = min(target_rows, vmem_rows, _round_up(n, 8))
    if block_rows is not None:
        tile = min(tile, _round_up(block_rows, 8))
    return max(8, _round_up(tile, 8))


def contrastive_loss(emb_i, emb_j, temperature=0.2, block_rows=None):
    """Forward pass of the reference ContrastiveLoss (negatives_mask == eye, as written).

    Inputs are streamed at their stored dtype (pass bf16 to halve HBM traffic);
    all accumulation happens in float32 inside the kernel.
    """
    n, d = emb_i.shape
    assert emb_j.shape == (n, d)

    tile_m = _choose_tile_m(n, d, jnp.dtype(emb_i.dtype).itemsize, block_rows)
    num_tiles = pl.cdiv(n, tile_m)
    tiles_per_core = pl.cdiv(num_tiles, 2)   # split row tiles over (up to) 2 TensorCores

    def in_map(c, i):
        # Clamp so the DMA'd block always starts in-bounds; out-of-range logical tiles
        # are fully masked in-kernel (their logical row ids are all >= n).
        return (jnp.minimum(c * tiles_per_core + i, num_tiles - 1), 0)

    kernel = functools.partial(_contrastive_tile_kernel,
                               n=n, tile_m=tile_m, tiles_per_core=tiles_per_core)

    out = pl.pallas_call(
        kernel,
        out_shape=jax.ShapeDtypeStruct((2 * 8, 128), jnp.float32),
        grid_spec=pltpu.PrefetchScalarGridSpec(
            num_scalar_prefetch=0,
            grid=(2, tiles_per_core),
            in_specs=[
                pl.BlockSpec((tile_m, d), in_map),   # emb_i row tile
                pl.BlockSpec((tile_m, d), in_map),   # emb_j row tile
            ],
            out_specs=pl.BlockSpec((8, 128), lambda c, i: (c, 0)),  # per-core resident block
            scratch_shapes=[pltpu.VMEM((1, 1), jnp.float32)],       # per-core accumulator
        ),
        compiler_params=pltpu.CompilerParams(
            dimension_semantics=("parallel", "arbitrary"),
            vmem_limit_bytes=32 * 1024 * 1024,
        ),
    )(emb_i, emb_j)

    raw = out[0, 0] + out[8, 0]
    # Temperature and 1/(2N) are applied outside the kernel (no recompile when they change).
    inv_t = 1.0 / jnp.asarray(temperature, dtype=jnp.float32)
    return raw * inv_t / (2.0 * n)


def _reference_loss(emb_i, emb_j, temperature=0.2):
    # Pure-JAX reproduction of the PyTorch forward (exp/log round-trip, eye negatives_mask).
    n = emb_i.shape[0]
    zi = emb_i / jnp.maximum(jnp.linalg.norm(emb_i, axis=1, keepdims=True), 1e-12)
    zj = emb_j / jnp.maximum(jnp.linalg.norm(emb_j, axis=1, keepdims=True), 1e-12)
    reps = jnp.concatenate([zi, zj], axis=0)
    sim = reps @ reps.T
    sim_ij = jnp.diagonal(sim, offset=n)
    sim_ji = jnp.diagonal(sim, offset=-n)
    positives = jnp.concatenate([sim_ij, sim_ji], axis=0)
    nominator = jnp.exp(positives / temperature)
    denominator = jnp.sum(jnp.eye(2 * n) * jnp.exp(sim / temperature), axis=1)
    loss_partial = -jnp.log(nominator / denominator)
    return jnp.sum(loss_partial) / (2 * n)


if __name__ == "__main__":
    dim = 32
    key = jax.random.PRNGKey(0)
    k1, k2, k3, k4, k5, k6 = jax.random.split(key, 6)

    # Case 1: module's nominal batch_size (multiple of 8, single tile).
    emb_i = jax.random.normal(k1, (8, dim), dtype=jnp.float32)
    emb_j = jax.random.normal(k2, (8, dim), dtype=jnp.float32)
    loss = jax.block_until_ready(contrastive_loss(emb_i, emb_j, temperature=0.2))
    ref = jax.block_until_ready(_reference_loss(emb_i, emb_j, temperature=0.2))
    assert np.allclose(np.asarray(loss), np.asarray(ref), rtol=1e-4, atol=1e-5), (loss, ref)

    # Case 2: ragged batch (exercises in-kernel tail-row masking, no wrapper padding).
    emb_i2 = jax.random.normal(k3, (10, dim), dtype=jnp.float32)
    emb_j2 = jax.random.normal(k4, (10, dim), dtype=jnp.float32)
    loss2 = jax.block_until_ready(contrastive_loss(emb_i2, emb_j2, temperature=0.2))
    ref2 = jax.block_until_ready(_reference_loss(emb_i2, emb_j2, temperature=0.2))
    assert np.allclose(np.asarray(loss2), np.asarray(ref2), rtol=1e-4, atol=1e-5), (loss2, ref2)

    # Case 3: multi-tile grid + 2-core split + out-of-range tile clamping (tiny forced tile).
    emb_i3 = jax.random.normal(k5, (40, dim), dtype=jnp.float32)
    emb_j3 = jax.random.normal(k6, (40, dim), dtype=jnp.float32)
    loss3 = jax.block_until_ready(contrastive_loss(emb_i3, emb_j3, temperature=0.5, block_rows=8))
    ref3 = jax.block_until_ready(_reference_loss(emb_i3, emb_j3, temperature=0.5))
    assert np.allclose(np.asarray(loss3), np.asarray(ref3), rtol=1e-4, atol=1e-5), (loss3, ref3)

    print("KERNEL_OK")
</pallas_src>

<mosaic_0001>
module attributes {stable_mosaic.version = 11 : i64} {
  func.func @_contrastive_tile_kernel(%arg0: i32, %arg1: i32, %arg2: memref<8x32xf32, #tpu.memory_space<vmem>>, %arg3: memref<8x32xf32, #tpu.memory_space<vmem>>, %arg4: memref<8x128xf32, #tpu.memory_space<vmem>>, %arg5: memref<1x1xf32, #tpu.memory_space<vmem>>) attributes {dimension_semantics = [#tpu.dimension_semantics<parallel>, #tpu.dimension_semantics<arbitrary>], iteration_bounds = array<i64: 2, 1>, scalar_prefetch = 0 : i64, scratch_operands = 1 : i64, tpu.core_type = #tpu.core_type<tc>, window_params = [{transform_indices = @transform_0, window_bounds = array<i64: 8, 32>}, {transform_indices = @transform_1, window_bounds = array<i64: 8, 32>}, {transform_indices = @transform_2, window_bounds = array<i64: 8, 128>}]} {
    %c0_i32 = arith.constant 0 : i32
    %0 = arith.cmpi eq, %arg1, %c0_i32 : i32
    %1 = arith.extui %0 : i1 to i32
    %c0_i32_0 = arith.constant 0 : i32
    %2 = arith.cmpi ne, %1, %c0_i32_0 : i32
    scf.if %2 {
      %cst_20 = arith.constant 0.000000e+00 : f32
      %52 = vector.broadcast %cst_20 : f32 to vector<1x1xf32>
      %c0_21 = arith.constant 0 : index
      %c0_22 = arith.constant 0 : index
      %53 = vector.load %arg5[%c0_21, %c0_22] : memref<1x1xf32, #tpu.memory_space<vmem>>, vector<1x1xf32>
      tpu.vector_store %arg5[%c0_21, %c0_22], %52 {strides = array<i32>} : memref<1x1xf32, #tpu.memory_space<vmem>>, vector<1x1xf32>,
    } else {
    }
    %c0 = arith.constant 0 : index
    %c0_1 = arith.constant 0 : index
    %3 = vector.load %arg2[%c0, %c0_1] : memref<8x32xf32, #tpu.memory_space<vmem>>, vector<8x32xf32>
    %c0_2 = arith.constant 0 : index
    %c0_3 = arith.constant 0 : index
    %4 = vector.load %arg3[%c0_2, %c0_3] : memref<8x32xf32, #tpu.memory_space<vmem>>, vector<8x32xf32>
    %5 = arith.mulf %3, %3 : vector<8x32xf32>
    %cst = arith.constant dense<0.000000e+00> : vector<8xf32>
    %6 = vector.multi_reduction <add>, %5, %cst [1] : vector<8x32xf32> to vector<8xf32>
    %7 = vector.shape_cast %6 : vector<8xf32> to vector<8x1xf32>
    %8 = arith.mulf %4, %4 : vector<8x32xf32>
    %cst_4 = arith.constant dense<0.000000e+00> : vector<8xf32>
    %9 = vector.multi_reduction <add>, %8, %cst_4 [1] : vector<8x32xf32> to vector<8xf32>
    %10 = vector.shape_cast %9 : vector<8xf32> to vector<8x1xf32>
    %11 = arith.mulf %3, %4 : vector<8x32xf32>
    %cst_5 = arith.constant dense<0.000000e+00> : vector<8xf32>
    %12 = vector.multi_reduction <add>, %11, %cst_5 [1] : vector<8x32xf32> to vector<8xf32>
    %13 = vector.shape_cast %12 : vector<8xf32> to vector<8x1xf32>
    %14 = math.sqrt %7 : vector<8x1xf32>
    %cst_6 = arith.constant 9.99999996E-13 : f32
    %15 = vector.broadcast %cst_6 : f32 to vector<8x1xf32>
    %16 = arith.maximumf %14, %15 : vector<8x1xf32>
    %cst_7 = arith.constant 1.000000e+00 : f32
    %17 = vector.broadcast %cst_7 : f32 to vector<8x1xf32>
    %18 = arith.divf %17, %16 : vector<8x1xf32>
    %19 = math.sqrt %10 : vector<8x1xf32>
    %cst_8 = arith.constant 9.99999996E-13 : f32
    %20 = vector.broadcast %cst_8 : f32 to vector<8x1xf32>
    %21 = arith.maximumf %19, %20 : vector<8x1xf32>
    %cst_9 = arith.constant 1.000000e+00 : f32
    %22 = vector.broadcast %cst_9 : f32 to vector<8x1xf32>
    %23 = arith.divf %22, %21 : vector<8x1xf32>
    %24 = arith.mulf %18, %18 : vector<8x1xf32>
    %25 = arith.mulf %7, %24 : vector<8x1xf32>
    %26 = arith.mulf %23, %23 : vector<8x1xf32>
    %27 = arith.mulf %10, %26 : vector<8x1xf32>
    %28 = arith.addf %25, %27 : vector<8x1xf32>
    %cst_10 = arith.constant 2.000000e+00 : f32
    %29 = vector.broadcast %cst_10 : f32 to vector<8x1xf32>
    %30 = arith.mulf %29, %13 : vector<8x1xf32>
    %31 = arith.mulf %18, %23 : vector<8x1xf32>
    %32 = arith.mulf %30, %31 : vector<8x1xf32>
    %33 = arith.subf %28, %32 : vector<8x1xf32>
    %c1_i32 = arith.constant 1 : i32
    %34 = arith.muli %arg0, %c1_i32 : i32
    %35 = arith.addi %34, %arg1 : i32
    %36 = tpu.iota {dimensions = array<i32: 0>} : vector<8x1xi32>
    %c8_i32 = arith.constant 8 : i32
    %37 = arith.muli %35, %c8_i32 : i32
    %38 = vector.broadcast %37 : i32 to vector<8x1xi32>
    %39 = arith.addi %38, %36 : vector<8x1xi32>
    %c8_i32_11 = arith.constant 8 : i32
    %40 = vector.broadcast %c8_i32_11 : i32 to vector<8x1xi32>
    %41 = arith.cmpi slt, %39, %40 : vector<8x1xi32>
    %c0_12 = arith.constant 0 : index
    %c0_13 = arith.constant 0 : index
    %42 = vector.load %arg5[%c0_12, %c0_13] : memref<1x1xf32, #tpu.memory_space<vmem>>, vector<1x1xf32>
    %cst_14 = arith.constant 0.000000e+00 : f32
    %43 = vector.broadcast %cst_14 : f32 to vector<8x1xf32>
    %44 = arith.select %41, %33, %43 : vector<8x1xi1>, vector<8x1xf32>
    %cst_15 = arith.constant dense<0.000000e+00> : vector<1xf32>
    %45 = vector.multi_reduction <add>, %44, %cst_15 [0] : vector<8x1xf32> to vector<1xf32>
    %46 = vector.shape_cast %45 : vector<1xf32> to vector<1x1xf32>
    %47 = arith.addf %42, %46 : vector<1x1xf32>
    %c0_16 = arith.constant 0 : index
    %c0_17 = arith.constant 0 : index
    %48 = vector.load %arg5[%c0_16, %c0_17] : memref<1x1xf32, #tpu.memory_space<vmem>>, vector<1x1xf32>
    tpu.vector_store %arg5[%c0_16, %c0_17], %47 {strides = array<i32>} : memref<1x1xf32, #tpu.memory_space<vmem>>, vector<1x1xf32>,
    %c0_i32_18 = arith.constant 0 : i32
    %49 = arith.cmpi eq, %arg1, %c0_i32_18 : i32
    %50 = arith.extui %49 : i1 to i32
    %c0_i32_19 = arith.constant 0 : i32
    %51 = arith.cmpi ne, %50, %c0_i32_19 : i32
    scf.if %51 {
      %c0_20 = arith.constant 0 : index
      %c0_21 = arith.constant 0 : index
      %52 = vector.load %arg5[%c0_20, %c0_21] : memref<1x1xf32, #tpu.memory_space<vmem>>, vector<1x1xf32>
      %53 = vector.shape_cast %52 : vector<1x1xf32> to vector<1x1xf32>
      %54 = vector.broadcast %53 : vector<1x1xf32> to vector<8x128xf32>
      %c0_22 = arith.constant 0 : index
      %c0_23 = arith.constant 0 : index
      %55 = vector.load %arg4[%c0_22, %c0_23] : memref<8x128xf32, #tpu.memory_space<vmem>>, vector<8x128xf32>
      tpu.vector_store %arg4[%c0_22, %c0_23], %54 {strides = array<i32>} : memref<8x128xf32, #tpu.memory_space<vmem>>, vector<8x128xf32>,
    } else {
    }
    return
  }
  func.func @transform_0(%arg0: i32, %arg1: i32) -> (i32, i32) {
    %c1_i32 = arith.constant 1 : i32
    %0 = arith.muli %arg0, %c1_i32 : i32
    %1 = arith.addi %0, %arg1 : i32
    %c0_i32 = arith.constant 0 : i32
    %2 = arith.minsi %1, %c0_i32 : i32
    %c0_i32_0 = arith.constant 0 : i32
    %c0_i32_1 = arith.constant 0 : i32
    return %2, %c0_i32_0 : i32, i32
  }
  func.func @transform_1(%arg0: i32, %arg1: i32) -> (i32, i32) {
    %c1_i32 = arith.constant 1 : i32
    %0 = arith.muli %arg0, %c1_i32 : i32
    %1 = arith.addi %0, %arg1 : i32
    %c0_i32 = arith.constant 0 : i32
    %2 = arith.minsi %1, %c0_i32 : i32
    %c0_i32_0 = arith.constant 0 : i32
    %c0_i32_1 = arith.constant 0 : i32
    return %2, %c0_i32_0 : i32, i32
  }
  func.func @transform_2(%arg0: i32, %arg1: i32) -> (i32, i32) {
    %c0_i32 = arith.constant 0 : i32
    %c0_i32_0 = arith.constant 0 : i32
    return %arg0, %c0_i32 : i32, i32
  }
}

</mosaic_0001>

<bundles_post_ra>
// kernel: tpu_custom_call.1
= control target key start
LH: loop header
LB: loop body
LE: loop exit
PB: predicated region body
PF: predicated region fallthrough
CT: control target
= control target key end

     0   :  { %7 = vsyncpa [#allocation4], 0  ;;  %s971_s0 = inlined_call_operand.hbm [shape: f32[8,32], index: 0, kind: input, shape index: {}]   ;;  %s972_s1 = inlined_call_operand.hbm [shape: f32[8,32], index: 1, kind: input, shape index: {}]   ;;  %s973_s2 = inlined_call_operand.hbm [shape: f32[16,128], index: 2, kind: output, shape index: {}]  }
   0x1   :  { %9 = vsyncpa [#allocation4 + $0x1], 0 }
   0x2   :  { %10 = vsyncpa [#allocation7], 0 }
   0x3   :  { %12 = vsyncpa [#allocation7 + $0x1], 0 }
   0x4   :  { %13 = vsyncpa [#allocation5], 0 }
   0x5   :  { %15 = vsyncpa [#allocation5 + $0x1], 0  ;;  %s777_s9 = smov 0   ;;  %s779_s10 = smov 0  }
   0x6   :  { %s781_s11 = smov 0   ;;  %s783_s12 = smov 0  }
   0x7   :  { %s785_s13 = smov 0   ;;  %s787_s14 = smov 0  }
   0x8   :  { %s789_s15 = smov 0   ;;  %s791_s16 = smov 0  }
   0x9 LB: > { %s468_s17 = sadd.s32 4294967295, %s756_s16   ;;  %s469_s18 = sadd.s32 4294967294, %s756_s16   ;;  %s756_s16 = sphi %s791_s16, %s21_s16   ;;  %s752_s15 = sphi %s789_s15, %s985_s15   ;;  %s748_s14 = sphi %s787_s14, %s984_s14   ;;  %s744_s13 = sphi %s785_s13, %s961_s13   ;;  %s740_s12 = sphi %s783_s12, %s983_s12   ;;  %s736_s11 = sphi %s781_s11, %s982_s11   ;;  %s732_s10 = sphi %s779_s10, %s981_s10   ;;  %s728_s9 = sphi %s777_s9, %s980_s9  }
   0xa   : > { %s33_s19 = sadd.s32 1, %s752_s15  ;;  %p725_p1 = scmp.ne.s32.totalorder %s744_s13, 0 }
   0xb   : > { %p35_p0 = scmp.ge.s32.totalorder %s33_s19, 2  ;;  %p54_p2 = scmp.eq.s32.totalorder %s756_s16, 0 }
   0xc   : > { %p59_p3 = scmp.ne.s32.totalorder %s744_s13, %s740_s12  ;;  %p60_p5 = scmp.eq.s32.totalorder %s468_s17, 0 }
   0xd   : > { %s987_s19 = smov (%p35_p0, %s33_s19), 0  ;;  %p823_p4 = por %p725_p1, %p54_p2 }
   0xe   : > { %p827_p6 = por %p60_p5, %p59_p3  ;;  %s101_s22 = ssub.s32 %s752_s15, %s987_s19 }
   0xf   : > { %p102_p7 = scmp.eq.s32.totalorder %s101_s22, 0  ;;  %s104_s23 = sadd.s32 1, %s736_s11 }
  0x10   : > { %p114_p8 = scmp.ne.s32.totalorder %s736_s11, %s732_s10  ;;  %p115_p9 = scmp.eq.s32.totalorder %s468_s17, 1 }
  0x11   : > { %s835_s24 = scalar_select %p102_p7, %s736_s11, %s104_s23  }
  0x12   : > { %p120_p10 = scmp.ne.s32.totalorder %s732_s10, %s728_s9  ;;  %p121_p11 = scmp.eq.s32.totalorder %s469_s18, 1 }
  0x13   : > { %p841_p12 = por %p115_p9, %p114_p8  ;;  %p471_p13 = scmp.ge.s32.totalorder %s756_s16, 2 }
  0x14   : > { %p846_p0 = por %p121_p11, %p120_p10  ;;  %p502_p1 = scmp.lt.s32.totalorder %s756_s16, 2 }
  0x15   : > { %s154_s29 = sshll.u32 %s971_s0, 4  ;;  %s758_s30 = smov [#allocation3]   ;;  %s155_s29 = int_to_ptr.hbm [resolvable:$true] %s154_s29 }
  0x16   : > { %s156_s3 = sshll.u32 %s758_s30, 4  ;;  %p856_p2 = pnand %p502_p1, %p823_p4  ;;  %s157_s3 = int_to_ptr.vmem [resolvable:$true] %s156_s3 }
  0x17   : > { %p476_p3 = scmp.ge.s32.totalorder %s756_s16, 1  ;;  %p183_p5 = scmp.lt.s32.totalorder %s756_s16, 3 }
  0x18   : > { %s589_s5 = sshra.s32 %s155_s29, 4  ;;  %p593_p8 = pneg %p856_p2  ;;  %s590_s5 = int_to_ptr.hbm [resolvable:$true] %s589_s5 }
  0x19   : > { %s591_s6 = scalar_lea.hbm %s590_s5, 8  ;;  %s596_s12 = scalar_lea.hbm %s971_s0, 8 }
  0x1a   : > { %p592_p7 = scmp.ne.s32.totalorder %s590_s5, %s591_s6  ;;  %p598_p4 = scmp.lt.s32.totalorder %s596_s12, %s591_s6 }
  0x1c   : > { %p594_p9 = pnand %p593_p8, %p592_p7 }
  0x1e   : > { %p595_p10 = pneg %p594_p9 }
  0x20   : > { %p600_p11 = pnand %p598_p4, %p595_p10 }
  0x22   : > { %603 = shalt.err (!%p600_p11)
}
  0x23   : > { %494 = dma.hbm_to_vmem [thread:$0]  (!%p856_p2), %s155_s29, 128, %s157_s3, [#allocation4]  }
  0x24   : > { %p876_p1 = pnand %p476_p3, %p183_p5  ;;  %s176_s22 = sshll.u32 %s972_s1, 4  ;;  %s177_s22 = int_to_ptr.hbm [resolvable:$true] %s176_s22 }
  0x25   : > { %s759_s23 = smov [#allocation6]   ;;  %s619_s28 = sshra.s32 %s177_s22, 4  ;;  %s620_s28 = int_to_ptr.hbm [resolvable:$true] %s619_s28 }
  0x26   : > { %s178_s27 = sshll.u32 %s759_s23, 4  ;;  %s621_s30 = scalar_lea.hbm %s620_s28, 8  ;;  %s179_s27 = int_to_ptr.vmem [resolvable:$true] %s178_s27 }
  0x27   : > { %p622_p7 = scmp.ne.s32.totalorder %s620_s28, %s621_s30  ;;  %s626_s5 = scalar_lea.hbm %s972_s1, 8 }
  0x28   : > { %p628_p3 = scmp.lt.s32.totalorder %s626_s5, %s621_s30 }
  0x29   : > { %p624_p9 = pnand %p622_p7, %p593_p8 }
  0x2b   : > { %p625_p10 = pneg %p624_p9 }
  0x2d   : > { %p630_p5 = pnand %p628_p3, %p625_p10 }
  0x2f   : > { %633 = shalt.err (!%p630_p5)
}
  0x30   : > { %497 = dma.hbm_to_vmem [thread:$0]  (!%p856_p2), %s177_s22, 128, %s179_s27, [#allocation7]  }
  0x31   : > { %187 = sbr.rel (%p876_p1) target bundleno = 374 (0x176), region = 28  ;;  %s189_s6 = sand.u32 (!%p876_p1), 1, %s744_s13  }
  0x32   : > { %s477_s7 = sshll.u32 (!%p876_p1), %s189_s6, 3  ;;  %s190_s8 = scalar_lea.sflag (!%p876_p1), [#allocation4], %s189_s6 }
  0x33   : > { %s193_s12 = scalar_lea.vmem (!%p876_p1), [#allocation3], %s477_s7 }
  0x36   : > { %714 = dma.done.wait (%p827_p6), %s190_s8, 128  }
  0x37   : > { %716 = vsyncadd (%p827_p6), %s190_s8, 4294967168  ;;  %s200_s18 = scalar_lea.sflag [#allocation7], %s189_s6  ;;  %s203_s20 = scalar_lea.vmem [#allocation6], %s477_s7 }
  0x38   : > { %718 = dma.done.wait (%p827_p6), %s200_s18, 128  }
  0x39   : > { %720 = vsyncadd (%p827_p6), %s200_s18, 4294967168  ;;  %vm240_vm0 = vcmask 0   ;;  %v760_v0 = vmov 0.0   ;;  %v242_v1 = vld [vmem:[%s193_s12] sm:$0xff]  ;;  %vm245_vm1 = vcmask 261120   ;;  %v243_v2 = vld [vmem:[%s203_s20] sm:$0xff]  ;;  %v323_v45 = vlaneseq }
  0x3a   : > { %241 = vst.msk [vmem:[#allocation2] sm:$0x1] %vm240_vm0, %v760_v0  ;;  %v244_v3 = vmul.f32 %v242_v1, %v242_v1  ;;  %v253_v4 = vmul.f32 %v243_v2, %v242_v1  ;;  %v249_v7 = vmul.f32 %v243_v2, %v243_v2  ;;  %v761_v44 = vmov 0   ;;  %s480_s21 = sshll.u32 %s748_s14, 3  ;;  %s227_s4 = sand.u32 1, %s732_s10  }
  0x3b   : > { %578 = vset.pattern.permute.xlu1 %v761_v44  ;;  %579 = vset.pattern.permute.xlu0 %v761_v44  ;;  %v324_v52 = vshrl.u32 %v323_v45, 7  ;;  %v326_v55 = vstv %s480_s21  ;;  %s479_s17 = sshll.u32 %s227_s4, 3  ;;  %s362_s27 = scalar_lea.hbm %s973_s2, %s480_s21 }
  0x3c   : > { %v246_v5 = vsel %vm245_vm1, %v244_v3, 0.0  ;;  %v254_v6 = vsel %vm245_vm1, %v253_v4, 0.0  ;;  %v250_v8 = vsel %vm245_vm1, %v249_v7, 0.0  ;;  %s229_s28 = scalar_lea.vmem [#allocation8], %s479_s17  ;;  %s366_s29 = sshll.u32 %s362_s27, 4  ;;  %s367_s29 = int_to_ptr.hbm [resolvable:$true] %s366_s29 }
  0x3d   : > { %247 = vadd.xlane.f32.xlu0 %v246_v5  ;;  %255 = vadd.xlane.f32.xlu1 %v254_v6  ;;  %v327_v62 = vadd.s32 %v326_v55, %v324_v52  ;;  %s364_s30 = sshll.u32 %s229_s28, 4  ;;  %s352_s3 = scalar_lea.sflag [#allocation5], %s227_s4  ;;  %s365_s30 = int_to_ptr.vmem [resolvable:$true] %s364_s30 }
  0x3e   : > { %s663_s5 = sshra.s32 %s367_s29, 4  ;;  %s669_s8 = scalar_lea.hbm %s973_s2, 16  ;;  %s664_s5 = int_to_ptr.hbm [resolvable:$true] %s663_s5 }
  0x3f   : > { %vm328_vm14 = vcmp.lt.s32.totalorder %v327_v62, 8  ;;  %s665_s6 = scalar_lea.hbm %s664_s5, 8  ;;  %p670_p4 = scmp.lt.s32.totalorder %s664_s5, %s973_s2 }
  0x40   : > { %p666_p6 = scmp.ne.s32.totalorder %s664_s5, %s665_s6  ;;  %p671_p11 = scmp.lt.s32.totalorder %s669_s8, %s665_s6 }
  0x42   : > { %p667_p2 = pnand %p666_p6, %p841_p12  ;;  %p672_p1 = por %p671_p11, %p670_p4 }
  0x44   : > { %p668_p8 = pneg %p667_p2 }
  0x45   : > { %251 = vadd.xlane.f32.xlu0 %v250_v8 }
  0x46   : > { %p673_p7 = pnand %p672_p1, %p668_p8 }
  0xb0   : > { %v903_v9 = vpop.xlane.xlu0 %247  ;;  %v256_v53 = vpop.xlane.xlu1 %255 }
  0xb1   : > { %581 = vrsqrt.f32 %v903_v9  ;;  %vm264_vm2 = vcmp.eq.f32.partialorder %v903_v9, inf  ;;  %v267_v21 = vand.u32 2147483648, %v903_v9  ;;  %vm266_vm3 = vcmp.eq.f32.partialorder %v903_v9, 0.0 }
  0xb2   : > { %v318_v60 = vmul.f32 2.0, %v256_v53 }
  0xb7   : > { %v582_v10 = vpop.eup %581 }
  0xb8   : > { %v258_v11 = vmul.f32 %v582_v10, %v903_v9  ;;  %v907_v12 = vpop.xlane.xlu0 %251 }
  0xb9   : > { %583 = vrsqrt.f32 %v907_v12  ;;  %vm292_vm4 = vcmp.eq.f32.partialorder %v907_v12, inf  ;;  %v295_v29 = vand.u32 2147483648, %v907_v12  ;;  %vm294_vm5 = vcmp.eq.f32.partialorder %v907_v12, 0.0 }
  0xba   : > { %v259_v13 = vmul.f32 %v582_v10, %v258_v11  ;;  %v329_v11 = vld [vmem:[#allocation2] sm:$0x1] }
  0xbc   : > { %v260_v14 = vmul.f32 0.5, %v259_v13 }
  0xbe   : > { %v261_v15 = vsub.f32 1.5, %v260_v14 }
  0xbf   : > { %v584_v16 = vpop.eup %583 }
  0xc0   : > { %v262_v17 = vmul.f32 %v582_v10, %v261_v15  ;;  %v286_v18 = vmul.f32 %v584_v16, %v907_v12 }
  0xc2   : > { %v263_v19 = vmul.f32 %v262_v17, %v903_v9  ;;  %v287_v20 = vmul.f32 %v584_v16, %v286_v18 }
  0xc4   : > { %v265_v22 = vsel %vm264_vm2, %v903_v9, %v263_v19  ;;  %v288_v23 = vmul.f32 0.5, %v287_v20 }
  0xc5   : > { %v268_v24 = vsel %vm266_vm3, %v267_v21, %v265_v22 }
  0xc6   : > { %v289_v25 = vsub.f32 1.5, %v288_v23  ;;  %v269_v26 = vmax.f32 %v268_v24, 1e-12 }
  0xc8   : > { %v290_v27 = vmul.f32 %v584_v16, %v289_v25  ;;  %585 = vrcp.f32 %v269_v26  ;;  %v281_v39 = vand.u32 2147483648, %v269_v26  ;;  %vm275_vm7 = vweird.f32 %v269_v26 }
  0xc9   : > { %v279_v40 = vand.u32 2147483647, %v269_v26 }
  0xca   : > { %v291_v28 = vmul.f32 %v290_v27, %v907_v12  ;;  %v282_v46 = vor.u32 1.1754944e-38, %v281_v39 }
  0xcb   : > { %vm280_vm9 = vcmp.eq.f32.partialorder %v279_v40, 8.507059e+37 }
  0xcc   : > { %v293_v30 = vsel %vm292_vm4, %v907_v12, %v291_v28 }
  0xcd   : > { %v296_v31 = vsel %vm294_vm5, %v295_v29, %v293_v30 }
  0xce   : > { %v586_v32 = vpop.eup %585  ;;  %v297_v33 = vmax.f32 %v296_v31, 1e-12 }
  0xcf   : > { %v271_v34 = vmul.f32 %v586_v32, %v269_v26  ;;  %vm276_vm6 = vweird.f32 %v586_v32 }
  0xd0   : > { %587 = vrcp.f32 %v297_v33  ;;  %vm277_vm8 = vmor %vm275_vm7, %vm276_vm6  ;;  %v309_v47 = vand.u32 2147483648, %v297_v33  ;;  %v307_v49 = vand.u32 2147483647, %v297_v33  ;;  %vm303_vm11 = vweird.f32 %v297_v33 }
  0xd1   : > { %v272_v35 = vsub.f32 1.0, %v271_v34 }
  0xd2   : > { %v310_v54 = vor.u32 1.1754944e-38, %v309_v47  ;;  %vm308_vm13 = vcmp.eq.f32.partialorder %v307_v49, 8.507059e+37 }
  0xd3   : > { %v273_v36 = vmul.f32 %v586_v32, %v272_v35 }
  0xd5   : > { %v274_v37 = vadd.f32 %v586_v32, %v273_v36 }
  0xd6   : > { %v588_v38 = vpop.eup %587 }
  0xd7   : > { %v299_v41 = vmul.f32 %v588_v38, %v297_v33  ;;  %v278_v42 = vsel %vm277_vm8, %v586_v32, %v274_v37  ;;  %vm304_vm10 = vweird.f32 %v588_v38 }
  0xd8   : > { %v283_v50 = vsel %vm280_vm9, %v282_v46, %v278_v42  ;;  %vm305_vm12 = vmor %vm303_vm11, %vm304_vm10 }
  0xd9   : > { %v300_v43 = vsub.f32 1.0, %v299_v41  ;;  %v313_v57 = vmul.f32 %v283_v50, %v283_v50 }
  0xdb   : > { %v301_v48 = vmul.f32 %v588_v38, %v300_v43  ;;  %v314_v63 = vmul.f32 %v313_v57, %v903_v9 }
  0xdd   : > { %v302_v51 = vadd.f32 %v588_v38, %v301_v48 }
  0xdf   : > { %v306_v56 = vsel %vm305_vm12, %v588_v38, %v302_v51 }
  0xe0   : > { %v311_v58 = vsel %vm308_vm13, %v310_v54, %v306_v56 }
  0xe1   : > { %v315_v59 = vmul.f32 %v311_v58, %v311_v58  ;;  %v319_v61 = vmul.f32 %v311_v58, %v283_v50 }
  0xe3   : > { %v316_v0 = vmul.f32 %v315_v59, %v907_v12  ;;  %v320_v2 = vmul.f32 %v319_v61, %v318_v60 }
  0xe5   : > { %v317_v1 = vadd.f32 %v316_v0, %v314_v63 }
  0xe7   : > { %v321_v3 = vsub.f32 %v317_v1, %v320_v2 }
  0xe9   : > { %v330_v4 = vsel %vm328_vm14, %v321_v3, 0.0 }
  0xea   : > { %v331_v5 = vrot.slane %v330_v4, 4 }
  0xec   : > { %v332_v6 = vadd.f32 %v331_v5, %v330_v4 }
  0xee   : > { %v333_v7 = vrot.slane %v332_v6, 2 }
  0xf0   : > { %v334_v8 = vadd.f32 %v333_v7, %v332_v6 }
  0xf2   : > { %v335_v10 = vrot.slane %v334_v8, 1 }
  0xf4   : > { %v336_v13 = vadd.f32 %v335_v10, %v334_v8 }
  0xf6   : > { %v337_v14 = vadd.f32 %v336_v13, %v329_v11 }
  0xf8   : > { %339 = vst.msk [vmem:[#allocation2] sm:$0x1] %vm240_vm0, %v337_v14 }
  0xff   : > { %v580_v9 = vld [vmem:[#allocation2] ss:$0 sm:$0xff] }
 0x100   : > { %347 = vperm.xlu1 %578, %v580_v9  }
 0x172   : > { %v348_v12 = vpop.permute.xlu1 %347 }
 0x173   : > { %350 = vst [vmem:[%s229_s28] sm:$0xff] %v348_v12 }
 0x174   : > { %676 = shalt.err (!%p673_p7)
}
 0x175   : > { %489 = dma.vmem_to_hbm [thread:$0]  (%p841_p12), %s365_s30, 128, %s367_s29, %s352_s3  }
 0x176 PF: > { %s378_s20 = sand.u32 1, %s728_s9   ;;  %p499_p9 = pnand %p471_p13, %p846_p0 }
 0x177   : > { %s379_s21 = scalar_lea.sflag [#allocation5], %s378_s20 }
 0x178   : > { %p500_p10 = pneg %p499_p9 }
 0x17a   : > { %722 = dma.done.wait (%p500_p10), %s379_s21, 128  }
 0x17b   : > { %724 = vsyncadd (%p500_p10), %s379_s21, 4294967168  ;;  %s21_s16 = sadd.s32 1, %s756_s16   ;;  %s980_s9 = smov %s732_s10 }
 0x17c   : > { %p18_p3 = scmp.ge.s32.totalorder %s21_s16, 4   ;;  %s981_s10 = smov %s736_s11 }
 0x17d   : > { %s982_s11 = smov %s835_s24  ;;  %s983_s12 = smov %s744_s13 }
 0x17e   : > { %s961_s13 = smov 0   ;;  %s984_s14 = smov %s752_s15 }
 0x17f   : > { %s985_s15 = smov %s987_s19  ;;  %20 = sbr.rel (!%p18_p3) target bundleno = 9 (0x9), region = 94 }
 0x184   :  { %385 = vsyncpa [#allocation4], 1 }
 0x185   :  { %387 = vsyncpa [#allocation4 + $0x1], 1 }
 0x186   :  { %388 = vsyncpa [#allocation7], 1 }
 0x187   :  { %390 = vsyncpa [#allocation7 + $0x1], 1 }
 0x188   :  { %391 = vsyncpa [#allocation5], 1 }
 0x189   :  { %393 = vsyncpa [#allocation5 + $0x1], 1 }

</bundles_post_ra>
